<compile_context>
chip_gen: v7x
topology: tpu7x:2x2x1
jax: 0.10.0
libtpu: 0.0.40
codegen_flags: <defaults>
</compile_context>

<pallas_src>
import functools

import jax
import jax.numpy as jnp
import numpy as np
from jax.experimental import pallas as pl
from jax.experimental.pallas import tpu as pltpu

try:
    from scipy.optimize import linear_sum_assignment as _scipy_lsa
except Exception:  # pragma: no cover - scipy optional
    _scipy_lsa = None

BIG = float(np.finfo(np.float32).max)  # sentinel (reference uses finfo(float64).max)
_EPS = 1e-9


def _round_up(x, m):
    return ((x + m - 1) // m) * m


def _pick_tile(padded, candidates):
    """Largest candidate that divides the padded extent (no extra rounding of the array)."""
    for c in candidates:
        if padded % c == 0:
            return c
    return candidates[-1]


# ----------------------------------------------------------------------------
# Pallas kernel: one (TN, TM) tile of the masked pairwise matching-cost matrix
# ----------------------------------------------------------------------------
def _cost_kernel(*refs, cost_bbox_w, cost_giou_w, has_assoc):
    if has_assoc:
        o_ref, t_ref, assoc_ref, c_ref = refs
    else:
        o_ref, t_ref, c_ref = refs
        assoc_ref = None

    o = o_ref[...]          # (TN, 8): cx, cy, x0, y0, x1, y1, area, class_id
    t = t_ref[...]          # (8, TM): same fields, field-major over target boxes

    o_cx, o_cy = o[:, 0:1], o[:, 1:2]
    o_x0, o_y0, o_x1, o_y1 = o[:, 2:3], o[:, 3:4], o[:, 4:5], o[:, 5:6]
    o_ar, o_id = o[:, 6:7], o[:, 7:8]

    t_cx, t_cy = t[0:1, :], t[1:2, :]
    t_x0, t_y0, t_x1, t_y1 = t[2:3, :], t[3:4, :], t[4:5, :], t[5:6, :]
    t_ar, t_id = t[6:7, :], t[7:8, :]

    # L1 center distance, scaled straight into the accumulator.
    C = cost_bbox_w * (jnp.abs(o_cx - t_cx) + jnp.abs(o_cy - t_cy))            # (TN, TM)

    # Intersection / union (iw, ih, inter die before the enclosing-box pass).
    iw = jnp.maximum(jnp.minimum(o_x1, t_x1) - jnp.maximum(o_x0, t_x0), 0.0)
    ih = jnp.maximum(jnp.minimum(o_y1, t_y1) - jnp.maximum(o_y0, t_y0), 0.0)
    inter = iw * ih
    union = o_ar + t_ar - inter
    # approx reciprocal -> EUP slot (VALU stays free); eps clamp guards zero-area boxes
    iou = inter * pl.reciprocal(jnp.maximum(union, _EPS), approx=True)

    # Enclosing box.
    ew = jnp.maximum(jnp.maximum(o_x1, t_x1) - jnp.minimum(o_x0, t_x0), 0.0)
    eh = jnp.maximum(jnp.maximum(o_y1, t_y1) - jnp.minimum(o_y0, t_y0), 0.0)
    earea = ew * eh
    giou = iou - (earea - union) * pl.reciprocal(jnp.maximum(earea, _EPS), approx=True)

    # Folded weighted combine: wb*l1 + wg*(1 - giou)  (negation eliminated with G output).
    C = C + (cost_giou_w - cost_giou_w * giou)
    if has_assoc:
        C = C + (1.0 - assoc_ref[...])

    # Class-mismatch masking (padded rows/cols carry impossible ids -> self-mask to BIG).
    c_ref[...] = jnp.where(o_id == t_id, C, BIG)


def _derived_fields(b):
    """(n, 5) cxcywh+id -> (n, 8): cx, cy, x0, y0, x1, y1, area, class_id."""
    cx, cy, w, h, cid = b[:, 0], b[:, 1], b[:, 2], b[:, 3], b[:, 4]
    hw = 0.5 * w
    hh = 0.5 * h
    return jnp.stack([cx, cy, cx - hw, cy - hh, cx + hw, cy + hh, w * h, cid], axis=1)


@functools.lru_cache(maxsize=None)
def _build_cost_fn(n_pad, m_pad, tn, tm, has_assoc, cost_bbox_w, cost_giou_w):
    kernel = functools.partial(_cost_kernel,
                               cost_bbox_w=cost_bbox_w,
                               cost_giou_w=cost_giou_w,
                               has_assoc=has_assoc)
    in_specs = [
        pl.BlockSpec((tn, 8), lambda i, j: (i, 0)),   # out boxes: N-tiled, 8 derived fields
        pl.BlockSpec((8, tm), lambda i, j: (0, j)),   # tgt boxes: field-major, M-tiled
    ]
    if has_assoc:
        in_specs.append(pl.BlockSpec((tn, tm), lambda i, j: (i, j)))
    call = pl.pallas_call(
        kernel,
        out_shape=jax.ShapeDtypeStruct((n_pad, m_pad), jnp.float32),
        grid=(n_pad // tn, m_pad // tm),
        in_specs=in_specs,
        out_specs=pl.BlockSpec((tn, tm), lambda i, j: (i, j)),
        compiler_params=pltpu.CompilerParams(
            dimension_semantics=("parallel", "parallel")),
    )

    def fn(out_p, tgt_p, *maybe_assoc):
        o8 = _derived_fields(out_p)                  # (n_pad, 8)
        t8 = jnp.transpose(_derived_fields(tgt_p))   # (8, m_pad)
        return call(o8, t8, *maybe_assoc)

    return jax.jit(fn)


def matcher_cost(out_bbox, tgt_bbox, association, cost_bbox_w, cost_giou_w):
    """Device-side (N, M) float32 masked cost matrix (padding sliced away on device)."""
    out_bbox = jnp.asarray(out_bbox, dtype=jnp.float32)
    tgt_bbox = jnp.asarray(tgt_bbox, dtype=jnp.float32)
    N = int(out_bbox.shape[0])
    M = int(tgt_bbox.shape[0])

    # Pad only to the hardware-minimal (8, 128) granularity (also buckets shapes for the jit).
    n_pad = _round_up(max(N, 1), 8)
    m_pad = _round_up(max(M, 1), 128)
    tn = _pick_tile(n_pad, (128, 64, 32, 16, 8))
    tm = _pick_tile(m_pad, (1024, 512, 256, 128))

    # Pad predictions with neutral boxes, class id -1 (mismatches everything -> BIG).
    if n_pad > N:
        pad = jnp.tile(jnp.array([[0.0, 0.0, 1.0, 1.0, -1.0]], jnp.float32), (n_pad - N, 1))
        out_p = jnp.concatenate([out_bbox, pad], axis=0)
    else:
        out_p = out_bbox
    # Pad targets with class id -2.
    if m_pad > M:
        pad = jnp.tile(jnp.array([[0.0, 0.0, 1.0, 1.0, -2.0]], jnp.float32), (m_pad - M, 1))
        tgt_p = jnp.concatenate([tgt_bbox, pad], axis=0)
    else:
        tgt_p = tgt_bbox

    has_assoc = association is not None
    args = [out_p, tgt_p]
    if has_assoc:
        assoc = jnp.asarray(association, dtype=jnp.float32)
        assoc = jnp.pad(assoc, ((0, n_pad - N), (0, m_pad - M)), constant_values=1.0)
        args.append(assoc)

    fn = _build_cost_fn(n_pad, m_pad, tn, tm, has_assoc,
                        float(cost_bbox_w), float(cost_giou_w))
    C_pad = fn(*args)
    # Slice to the valid window on device: only N*M*4 bytes cross PCIe.
    return C_pad[:N, :M]


# ----------------------------------------------------------------------------
# Host-side Hungarian assignment (scipy if available, NumPy fallback)
# ----------------------------------------------------------------------------
def _lsa_numpy(cost):
    cost = np.asarray(cost, dtype=np.float64)
    transposed = False
    if cost.shape[0] > cost.shape[1]:
        cost = cost.T
        transposed = True
    n, m = cost.shape
    INF = np.inf
    u = np.zeros(n + 1)
    v = np.zeros(m + 1)
    p = np.zeros(m + 1, dtype=int)
    way = np.zeros(m + 1, dtype=int)
    for i in range(1, n + 1):
        p[0] = i
        j0 = 0
        minv = np.full(m + 1, INF)
        used = np.zeros(m + 1, dtype=bool)
        while True:
            used[j0] = True
            i0 = p[j0]
            delta = INF
            j1 = 0
            for j in range(1, m + 1):
                if not used[j]:
                    cur = cost[i0 - 1, j - 1] - u[i0] - v[j]
                    if cur < minv[j]:
                        minv[j] = cur
                        way[j] = j0
                    if minv[j] < delta:
                        delta = minv[j]
                        j1 = j
            for j in range(m + 1):
                if used[j]:
                    u[p[j]] += delta
                    v[j] -= delta
                else:
                    minv[j] -= delta
            j0 = j1
            if p[j0] == 0:
                break
        while j0 != 0:
            j1 = way[j0]
            p[j0] = p[j1]
            j0 = j1
    rows, cols = [], []
    for j in range(1, m + 1):
        if p[j] != 0:
            rows.append(p[j] - 1)
            cols.append(j - 1)
    rows = np.array(rows, dtype=int)
    cols = np.array(cols, dtype=int)
    if transposed:
        rows, cols = cols, rows
    order = np.argsort(rows)
    return rows[order], cols[order]


def _linear_sum_assignment(cost):
    if _scipy_lsa is not None:
        r, c = _scipy_lsa(cost)
        return np.asarray(r), np.asarray(c)
    return _lsa_numpy(cost)


def _exact_giou_pairs(out_np, tgt_np, rows, cols):
    """Exact float64 GIoU only for the matched (row, col) pairs."""
    if len(rows) == 0:
        return np.zeros((0,), dtype=np.float64)
    ob = np.asarray(out_np, dtype=np.float64)[rows, :4]
    tb = np.asarray(tgt_np, dtype=np.float64)[cols, :4]
    ox0, oy0 = ob[:, 0] - 0.5 * ob[:, 2], ob[:, 1] - 0.5 * ob[:, 3]
    ox1, oy1 = ob[:, 0] + 0.5 * ob[:, 2], ob[:, 1] + 0.5 * ob[:, 3]
    tx0, ty0 = tb[:, 0] - 0.5 * tb[:, 2], tb[:, 1] - 0.5 * tb[:, 3]
    tx1, ty1 = tb[:, 0] + 0.5 * tb[:, 2], tb[:, 1] + 0.5 * tb[:, 3]
    area_o = (ox1 - ox0) * (oy1 - oy0)
    area_t = (tx1 - tx0) * (ty1 - ty0)
    iw = np.clip(np.minimum(ox1, tx1) - np.maximum(ox0, tx0), 0, None)
    ih = np.clip(np.minimum(oy1, ty1) - np.maximum(oy0, ty0), 0, None)
    inter = iw * ih
    union = area_o + area_t - inter
    iou = inter / union
    ew = np.clip(np.maximum(ox1, tx1) - np.minimum(ox0, tx0), 0, None)
    eh = np.clip(np.maximum(oy1, ty1) - np.minimum(oy0, ty0), 0, None)
    earea = ew * eh
    return iou - (earea - union) / earea


# ----------------------------------------------------------------------------
# Module wrapper (mirrors HungarianMatcher.forward)
# ----------------------------------------------------------------------------
class HungarianMatcherPallas:
    def __init__(self, cost_bbox: float = 5, cost_giou: float = 2, min_giou: float = 0.5):
        self.cost_bbox = cost_bbox
        self.cost_giou = cost_giou
        assert cost_bbox != 0 or cost_giou != 0, "all costs cant be 0"
        self.max_cost_giou = 1 - min_giou

    def __call__(self, out_bbox, tgt_bbox, association=None):
        out_np = np.asarray(out_bbox, dtype=np.float32)
        tgt_np = np.asarray(tgt_bbox, dtype=np.float32)
        N, M = out_np.shape[0], tgt_np.shape[0]
        if N == 0 or M == 0:
            return [], []

        C_dev = matcher_cost(out_bbox, tgt_bbox, association,
                             self.cost_bbox, self.cost_giou)
        C = np.asarray(jax.block_until_ready(C_dev))   # (N, M) float32, no padding copied

        row_ind, col_ind = _linear_sum_assignment(C)
        # Exact GIoU recomputed on the host only for the matched pairs (threshold + mconf),
        # so the EUP approx reciprocal never touches the acceptance decision.
        giou = _exact_giou_pairs(out_np, tgt_np, row_ind, col_ind)
        cost_giou = -giou

        indices, mconf = [], []
        for k, (r, c) in enumerate(zip(row_ind, col_ind)):
            if 1.0 + cost_giou[k] <= self.max_cost_giou and C[r, c] < BIG:
                indices.append((int(r), int(c)))
                mconf.append(float(-cost_giou[k]))
        return indices, mconf


# ----------------------------------------------------------------------------
# NumPy reference for the cost matrix (correctness check)
# ----------------------------------------------------------------------------
def _cost_reference(out_bbox, tgt_bbox, cost_bbox_w, cost_giou_w, association=None):
    ob = np.asarray(out_bbox, dtype=np.float64)
    tb = np.asarray(tgt_bbox, dtype=np.float64)
    l1 = np.abs(ob[:, None, 0] - tb[None, :, 0]) + np.abs(ob[:, None, 1] - tb[None, :, 1])

    def to_xyxy(b):
        cx, cy, w, h = b[:, 0], b[:, 1], b[:, 2], b[:, 3]
        return np.stack([cx - 0.5 * w, cy - 0.5 * h, cx + 0.5 * w, cy + 0.5 * h], axis=-1)

    b1, b2 = to_xyxy(ob), to_xyxy(tb)
    a1 = (b1[:, 2] - b1[:, 0]) * (b1[:, 3] - b1[:, 1])
    a2 = (b2[:, 2] - b2[:, 0]) * (b2[:, 3] - b2[:, 1])
    lt = np.maximum(b1[:, None, :2], b2[None, :, :2])
    rb = np.minimum(b1[:, None, 2:], b2[None, :, 2:])
    wh = np.clip(rb - lt, 0, None)
    inter = wh[..., 0] * wh[..., 1]
    union = a1[:, None] + a2[None, :] - inter
    iou = inter / union
    elt = np.minimum(b1[:, None, :2], b2[None, :, :2])
    erb = np.maximum(b1[:, None, 2:], b2[None, :, 2:])
    ewh = np.clip(erb - elt, 0, None)
    earea = ewh[..., 0] * ewh[..., 1]
    giou = iou - (earea - union) / earea
    C = cost_bbox_w * l1 + cost_giou_w * (1 - giou)
    if association is not None:
        C = C + (1.0 - np.asarray(association, dtype=np.float64))
    cls_eq = ob[:, None, 4] == tb[None, :, 4]
    C = np.where(cls_eq, C, BIG)
    return C


if __name__ == "__main__":
    key = jax.random.PRNGKey(0)
    k1, k2, k3, k4, k5, k6, k7 = jax.random.split(key, 7)

    N, M = 8, 6  # num predicted boxes, num target boxes

    def make_boxes(kc, kw, kid, n):
        centers = jax.random.uniform(kc, (n, 2), minval=0.2, maxval=0.8)
        sizes = jax.random.uniform(kw, (n, 2), minval=0.1, maxval=0.3)
        ids = jax.random.randint(kid, (n, 1), 0, 3).astype(jnp.float32)
        return jnp.concatenate([centers, sizes, ids], axis=1)  # [n, 5]

    out_bbox = make_boxes(k1, k2, k3, N)   # [8, 5]
    tgt_bbox = make_boxes(k4, k5, k6, M)   # [6, 5]
    assoc = jax.random.uniform(k7, (N, M), minval=0.0, maxval=1.0)

    matcher = HungarianMatcherPallas(cost_bbox=5, cost_giou=2, min_giou=0.5)

    # --- cost-matrix correctness (association=None path; no assoc input in kernel) ---
    C = matcher_cost(out_bbox, tgt_bbox, None, 5.0, 2.0)
    jax.block_until_ready(C)
    C_ref = _cost_reference(out_bbox, tgt_bbox, 5.0, 2.0, None)
    # Tolerance accounts for the EUP approx reciprocal (~1e-3 relative).
    np.testing.assert_allclose(np.asarray(C), C_ref, rtol=1e-2, atol=1e-2)

    # --- cost-matrix correctness (association path) ---
    C2 = matcher_cost(out_bbox, tgt_bbox, assoc, 5.0, 2.0)
    jax.block_until_ready(C2)
    C2_ref = _cost_reference(out_bbox, tgt_bbox, 5.0, 2.0, np.asarray(assoc))
    np.testing.assert_allclose(np.asarray(C2), C2_ref, rtol=1e-2, atol=1e-2)

    # --- a second (larger) shape bucket to exercise tiling / padding ---
    N2, M2 = 40, 200
    kk = jax.random.split(jax.random.PRNGKey(1), 6)
    out2 = make_boxes(kk[0], kk[1], kk[2], N2)
    tgt2 = make_boxes(kk[3], kk[4], kk[5], M2)
    C3 = matcher_cost(out2, tgt2, None, 5.0, 2.0)
    jax.block_until_ready(C3)
    C3_ref = _cost_reference(out2, tgt2, 5.0, 2.0, None)
    np.testing.assert_allclose(np.asarray(C3), C3_ref, rtol=1e-2, atol=1e-2)

    # --- full forward (indices, mconf) like the PyTorch module ---
    indices, mconf = matcher(out_bbox, tgt_bbox, association=None)
    indices2, mconf2 = matcher(out_bbox, tgt_bbox, association=assoc)
    assert isinstance(indices, list) and isinstance(mconf, list)
    assert len(indices) == len(mconf) and len(indices2) == len(mconf2)

    print("KERNEL_OK")
</pallas_src>

<mosaic_0001>
module attributes {stable_mosaic.version = 11 : i64} {
  func.func @_cost_kernel(%arg0: i32, %arg1: i32, %arg2: memref<8x8xf32, #tpu.memory_space<vmem>>, %arg3: memref<8x128xf32, #tpu.memory_space<vmem>>, %arg4: memref<8x128xf32, #tpu.memory_space<vmem>>) attributes {dimension_semantics = [#tpu.dimension_semantics<parallel>, #tpu.dimension_semantics<parallel>], iteration_bounds = array<i64: 1, 1>, scalar_prefetch = 0 : i64, scratch_operands = 0 : i64, tpu.core_type = #tpu.core_type<tc>, window_params = [{transform_indices = @transform_0, window_bounds = array<i64: 8, 8>}, {transform_indices = @transform_1, window_bounds = array<i64: 8, 128>}, {transform_indices = @transform_2, window_bounds = array<i64: 8, 128>}]} {
    %c0 = arith.constant 0 : index
    %c0_0 = arith.constant 0 : index
    %0 = vector.load %arg2[%c0, %c0_0] : memref<8x8xf32, #tpu.memory_space<vmem>>, vector<8x8xf32>
    %c0_1 = arith.constant 0 : index
    %c0_2 = arith.constant 0 : index
    %1 = vector.load %arg3[%c0_1, %c0_2] : memref<8x128xf32, #tpu.memory_space<vmem>>, vector<8x128xf32>
    %2 = vector.extract_strided_slice %0 {offsets = [0, 0], sizes = [8, 1], strides = [1, 1]} : vector<8x8xf32> to vector<8x1xf32>
    %3 = vector.extract_strided_slice %0 {offsets = [0, 1], sizes = [8, 1], strides = [1, 1]} : vector<8x8xf32> to vector<8x1xf32>
    %4 = vector.extract_strided_slice %0 {offsets = [0, 2], sizes = [8, 1], strides = [1, 1]} : vector<8x8xf32> to vector<8x1xf32>
    %5 = vector.extract_strided_slice %0 {offsets = [0, 3], sizes = [8, 1], strides = [1, 1]} : vector<8x8xf32> to vector<8x1xf32>
    %6 = vector.extract_strided_slice %0 {offsets = [0, 4], sizes = [8, 1], strides = [1, 1]} : vector<8x8xf32> to vector<8x1xf32>
    %7 = vector.extract_strided_slice %0 {offsets = [0, 5], sizes = [8, 1], strides = [1, 1]} : vector<8x8xf32> to vector<8x1xf32>
    %8 = vector.extract_strided_slice %0 {offsets = [0, 6], sizes = [8, 1], strides = [1, 1]} : vector<8x8xf32> to vector<8x1xf32>
    %9 = vector.extract_strided_slice %0 {offsets = [0, 7], sizes = [8, 1], strides = [1, 1]} : vector<8x8xf32> to vector<8x1xf32>
    %10 = vector.extract_strided_slice %1 {offsets = [0, 0], sizes = [1, 128], strides = [1, 1]} : vector<8x128xf32> to vector<1x128xf32>
    %11 = vector.extract_strided_slice %1 {offsets = [1, 0], sizes = [1, 128], strides = [1, 1]} : vector<8x128xf32> to vector<1x128xf32>
    %12 = vector.extract_strided_slice %1 {offsets = [2, 0], sizes = [1, 128], strides = [1, 1]} : vector<8x128xf32> to vector<1x128xf32>
    %13 = vector.extract_strided_slice %1 {offsets = [3, 0], sizes = [1, 128], strides = [1, 1]} : vector<8x128xf32> to vector<1x128xf32>
    %14 = vector.extract_strided_slice %1 {offsets = [4, 0], sizes = [1, 128], strides = [1, 1]} : vector<8x128xf32> to vector<1x128xf32>
    %15 = vector.extract_strided_slice %1 {offsets = [5, 0], sizes = [1, 128], strides = [1, 1]} : vector<8x128xf32> to vector<1x128xf32>
    %16 = vector.extract_strided_slice %1 {offsets = [6, 0], sizes = [1, 128], strides = [1, 1]} : vector<8x128xf32> to vector<1x128xf32>
    %17 = vector.extract_strided_slice %1 {offsets = [7, 0], sizes = [1, 128], strides = [1, 1]} : vector<8x128xf32> to vector<1x128xf32>
    %18 = vector.broadcast %2 : vector<8x1xf32> to vector<8x128xf32>
    %19 = vector.broadcast %10 : vector<1x128xf32> to vector<8x128xf32>
    %20 = arith.subf %18, %19 : vector<8x128xf32>
    %21 = math.absf %20 : vector<8x128xf32>
    %22 = vector.broadcast %3 : vector<8x1xf32> to vector<8x128xf32>
    %23 = vector.broadcast %11 : vector<1x128xf32> to vector<8x128xf32>
    %24 = arith.subf %22, %23 : vector<8x128xf32>
    %25 = math.absf %24 : vector<8x128xf32>
    %26 = arith.addf %21, %25 : vector<8x128xf32>
    %cst = arith.constant 5.000000e+00 : f32
    %27 = vector.broadcast %cst : f32 to vector<8x128xf32>
    %28 = arith.mulf %27, %26 : vector<8x128xf32>
    %29 = vector.broadcast %6 : vector<8x1xf32> to vector<8x128xf32>
    %30 = vector.broadcast %14 : vector<1x128xf32> to vector<8x128xf32>
    %31 = arith.minimumf %29, %30 : vector<8x128xf32>
    %32 = vector.broadcast %4 : vector<8x1xf32> to vector<8x128xf32>
    %33 = vector.broadcast %12 : vector<1x128xf32> to vector<8x128xf32>
    %34 = arith.maximumf %32, %33 : vector<8x128xf32>
    %35 = arith.subf %31, %34 : vector<8x128xf32>
    %cst_3 = arith.constant 0.000000e+00 : f32
    %36 = vector.broadcast %cst_3 : f32 to vector<8x128xf32>
    %37 = arith.maximumf %35, %36 : vector<8x128xf32>
    %38 = vector.broadcast %7 : vector<8x1xf32> to vector<8x128xf32>
    %39 = vector.broadcast %15 : vector<1x128xf32> to vector<8x128xf32>
    %40 = arith.minimumf %38, %39 : vector<8x128xf32>
    %41 = vector.broadcast %5 : vector<8x1xf32> to vector<8x128xf32>
    %42 = vector.broadcast %13 : vector<1x128xf32> to vector<8x128xf32>
    %43 = arith.maximumf %41, %42 : vector<8x128xf32>
    %44 = arith.subf %40, %43 : vector<8x128xf32>
    %cst_4 = arith.constant 0.000000e+00 : f32
    %45 = vector.broadcast %cst_4 : f32 to vector<8x128xf32>
    %46 = arith.maximumf %44, %45 : vector<8x128xf32>
    %47 = arith.mulf %37, %46 : vector<8x128xf32>
    %48 = vector.broadcast %8 : vector<8x1xf32> to vector<8x128xf32>
    %49 = vector.broadcast %16 : vector<1x128xf32> to vector<8x128xf32>
    %50 = arith.addf %48, %49 : vector<8x128xf32>
    %51 = arith.subf %50, %47 : vector<8x128xf32>
    %cst_5 = arith.constant 9.99999971E-10 : f32
    %52 = vector.broadcast %cst_5 : f32 to vector<8x128xf32>
    %53 = arith.maximumf %51, %52 : vector<8x128xf32>
    %54 = tpu.reciprocal %53 {approx = true} : vector<8x128xf32> -> vector<8x128xf32>
    %55 = arith.mulf %47, %54 : vector<8x128xf32>
    %56 = vector.broadcast %6 : vector<8x1xf32> to vector<8x128xf32>
    %57 = vector.broadcast %14 : vector<1x128xf32> to vector<8x128xf32>
    %58 = arith.maximumf %56, %57 : vector<8x128xf32>
    %59 = vector.broadcast %4 : vector<8x1xf32> to vector<8x128xf32>
    %60 = vector.broadcast %12 : vector<1x128xf32> to vector<8x128xf32>
    %61 = arith.minimumf %59, %60 : vector<8x128xf32>
    %62 = arith.subf %58, %61 : vector<8x128xf32>
    %cst_6 = arith.constant 0.000000e+00 : f32
    %63 = vector.broadcast %cst_6 : f32 to vector<8x128xf32>
    %64 = arith.maximumf %62, %63 : vector<8x128xf32>
    %65 = vector.broadcast %7 : vector<8x1xf32> to vector<8x128xf32>
    %66 = vector.broadcast %15 : vector<1x128xf32> to vector<8x128xf32>
    %67 = arith.maximumf %65, %66 : vector<8x128xf32>
    %68 = vector.broadcast %5 : vector<8x1xf32> to vector<8x128xf32>
    %69 = vector.broadcast %13 : vector<1x128xf32> to vector<8x128xf32>
    %70 = arith.minimumf %68, %69 : vector<8x128xf32>
    %71 = arith.subf %67, %70 : vector<8x128xf32>
    %cst_7 = arith.constant 0.000000e+00 : f32
    %72 = vector.broadcast %cst_7 : f32 to vector<8x128xf32>
    %73 = arith.maximumf %71, %72 : vector<8x128xf32>
    %74 = arith.mulf %64, %73 : vector<8x128xf32>
    %75 = arith.subf %74, %51 : vector<8x128xf32>
    %cst_8 = arith.constant 9.99999971E-10 : f32
    %76 = vector.broadcast %cst_8 : f32 to vector<8x128xf32>
    %77 = arith.maximumf %74, %76 : vector<8x128xf32>
    %78 = tpu.reciprocal %77 {approx = true} : vector<8x128xf32> -> vector<8x128xf32>
    %79 = arith.mulf %75, %78 : vector<8x128xf32>
    %80 = arith.subf %55, %79 : vector<8x128xf32>
    %cst_9 = arith.constant 2.000000e+00 : f32
    %81 = vector.broadcast %cst_9 : f32 to vector<8x128xf32>
    %82 = arith.mulf %81, %80 : vector<8x128xf32>
    %cst_10 = arith.constant 2.000000e+00 : f32
    %83 = vector.broadcast %cst_10 : f32 to vector<8x128xf32>
    %84 = arith.subf %83, %82 : vector<8x128xf32>
    %85 = arith.addf %28, %84 : vector<8x128xf32>
    %86 = vector.broadcast %9 : vector<8x1xf32> to vector<8x128xf32>
    %87 = vector.broadcast %17 : vector<1x128xf32> to vector<8x128xf32>
    %88 = arith.cmpf oeq, %86, %87 : vector<8x128xf32>
    %cst_11 = arith.constant 3.40282347E+38 : f32
    %89 = vector.broadcast %cst_11 : f32 to vector<8x128xf32>
    %90 = arith.select %88, %85, %89 : vector<8x128xi1>, vector<8x128xf32>
    %c0_12 = arith.constant 0 : index
    %c0_13 = arith.constant 0 : index
    %91 = vector.load %arg4[%c0_12, %c0_13] : memref<8x128xf32, #tpu.memory_space<vmem>>, vector<8x128xf32>
    tpu.vector_store %arg4[%c0_12, %c0_13], %90 {strides = array<i32>} : memref<8x128xf32, #tpu.memory_space<vmem>>, vector<8x128xf32>,
    return
  }
  func.func @transform_0(%arg0: i32, %arg1: i32) -> (i32, i32) {
    %c0_i32 = arith.constant 0 : i32
    %c0_i32_0 = arith.constant 0 : i32
    return %arg0, %c0_i32 : i32, i32
  }
  func.func @transform_1(%arg0: i32, %arg1: i32) -> (i32, i32) {
    %c0_i32 = arith.constant 0 : i32
    %c0_i32_0 = arith.constant 0 : i32
    return %c0_i32, %arg1 : i32, i32
  }
  func.func @transform_2(%arg0: i32, %arg1: i32) -> (i32, i32) {
    %c0_i32 = arith.constant 0 : i32
    return %arg0, %arg1 : i32, i32
  }
}

</mosaic_0001>

<bundles_post_ra>
// kernel: fn.1
= control target key start
LH: loop header
LB: loop body
LE: loop exit
PB: predicated region body
PF: predicated region fallthrough
CT: control target
= control target key end

     0   :  { %v179_v1 = vmov 5   ;;  %v180_v2 = vmov 4   ;;  %s221_s0 = inlined_call_operand.vmem [shape: f32[8,8], index: 0, kind: input, shape index: {}]   ;;  %s222_s1 = inlined_call_operand.vmem [shape: f32[8,128], index: 1, kind: input, shape index: {}]   ;;  %s223_s2 = inlined_call_operand.hbm [shape: f32[8,128], index: 2, kind: output, shape index: {}]  }
   0x1   :  { %v12_v0 = vld [vmem:[%s221_s0] sm:$0xff]  ;;  %144 = vset.pattern.permute.xlu1 %v179_v1  ;;  %142 = vset.pattern.permute.xlu0 %v180_v2 }
   0x2   :  { %7 = vsyncpa [#allocation3], 0  ;;  %58 = vperm.xlu1 %144, %v12_v0   ;;  %38 = vperm.xlu0 %142, %v12_v0   ;;  %v181_v3 = vmov 3   ;;  %v182_v4 = vmov 2   ;;  %v183_v5 = vmov 6   ;;  %v184_v6 = vmov 0  }
   0x3   :  { %v185_v7 = vmov 1   ;;  %v186_v8 = vmov 7   ;;  %v19_v9 = vlaneseq  ;;  %v13_v13 = vld [vmem:[%s222_s1] sm:$0xff]  ;;  %s187_s1 = smov [#allocation2]  }
   0x4   :  { %s125_s12 = sshll.u32 %s187_s1, 4  ;;  %s126_s12 = int_to_ptr.vmem [resolvable:$true] %s125_s12 }
   0x5   :  { %v20_v10 = vshrl.u32 %v19_v9, 7  ;;  %s155_s13 = scalar_lea.vmem %s126_s12, 128  ;;  %p160_p1 = scmp.lt.s32.totalorder %s126_s12, %s126_s12 }
   0x6   :  { %145 = vset.pattern.permute.xlu1 %v181_v3  ;;  %143 = vset.pattern.permute.xlu0 %v182_v4  ;;  %p156_p0 = scmp.ne.s32.totalorder %s126_s12, %s155_s13  ;;  %p161_p2 = scmp.lt.s32.totalorder %s155_s13, %s155_s13 }
   0x7   :  { %67 = vperm.xlu1 %145, %v12_v0   ;;  %47 = vperm.xlu0 %143, %v12_v0   ;;  %v63_v11 = vsub.s32 5, %v20_v10  ;;  %v43_v12 = vsub.s32 4, %v20_v10  ;;  %v72_v14 = vsub.s32 3, %v20_v10  ;;  %v52_v15 = vsub.s32 2, %v20_v10 }
   0x8   :  { %v84_v22 = vsub.s32 6, %v20_v10  ;;  %v31_v46 = vsub.s32 1, %v20_v10  ;;  %v21_v47 = vsub.s32 0, %v20_v10  ;;  %v114_v62 = vsub.s32 7, %v20_v10  ;;  %p162_p3 = por %p161_p2, %p160_p1 }
   0x9   :  { %v64_v18 = vrot.slane %v13_v13, %v63_v11  ;;  %v44_v19 = vrot.slane %v13_v13, %v43_v12  ;;  %v73_v20 = vrot.slane %v13_v13, %v72_v14  ;;  %v53_v21 = vrot.slane %v13_v13, %v52_v15 }
   0xa   :  { %v85_v33 = vrot.slane %v13_v13, %v84_v22  ;;  %v32_v51 = vrot.slane %v13_v13, %v31_v46  ;;  %v22_v52 = vrot.slane %v13_v13, %v21_v47  ;;  %v115_v3 = vrot.slane %v13_v13, %v114_v62  ;;  %p163_p4 = pnand %p162_p3, %p156_p0 }
   0xb   :  { %146 = vset.pattern.permute.xlu1 %v183_v5  ;;  %147 = vset.pattern.permute.xlu0 %v184_v6 }
   0xc   :  { %79 = vperm.xlu1 %146, %v12_v0   ;;  %16 = vperm.xlu0 %147, %v12_v0  }
  0x10   :  { %148 = vset.pattern.permute.xlu1 %v185_v7  ;;  %150 = vset.pattern.permute.xlu0 %v186_v8 }
  0x11   :  { %26 = vperm.xlu1 %148, %v12_v0  }
  0x15   :  { %149 = vset.pattern.permute.xlu1 %v186_v8 }
  0x16   :  { %109 = vperm.xlu1 %149, %v12_v0  }
  0x81   :  { %v59_v16 = vpop.permute.xlu1 %58  ;;  %v39_v17 = vpop.permute.xlu0 %38 }
  0x82   :  { %v65_v23 = vmin.f32 %v59_v16, %v64_v18  ;;  %v95_v24 = vmax.f32 %v59_v16, %v64_v18  ;;  %v45_v25 = vmin.f32 %v39_v17, %v44_v19  ;;  %v91_v26 = vmax.f32 %v39_v17, %v44_v19 }
  0x86   :  { %v68_v27 = vpop.permute.xlu1 %67  ;;  %v48_v28 = vpop.permute.xlu0 %47 }
  0x87   :  { %v74_v29 = vmax.f32 %v68_v27, %v73_v20  ;;  %v96_v30 = vmin.f32 %v68_v27, %v73_v20  ;;  %v54_v31 = vmax.f32 %v48_v28, %v53_v21  ;;  %v92_v32 = vmin.f32 %v48_v28, %v53_v21 }
  0x89   :  { %v75_v34 = vsub.f32 %v65_v23, %v74_v29  ;;  %v97_v35 = vsub.f32 %v95_v24, %v96_v30  ;;  %v55_v36 = vsub.f32 %v45_v25, %v54_v31  ;;  %v93_v37 = vsub.f32 %v91_v26, %v92_v32 }
  0x8b   :  { %v76_v38 = vmax.f32 %v75_v34, 0.0  ;;  %v98_v39 = vmax.f32 %v97_v35, 0.0  ;;  %v56_v40 = vmax.f32 %v55_v36, 0.0  ;;  %v94_v41 = vmax.f32 %v93_v37, 0.0  ;;  %v80_v42 = vpop.permute.xlu1 %79  ;;  %v17_v54 = vpop.permute.xlu0 %16 }
  0x8c   :  { %v86_v43 = vadd.f32 %v85_v33, %v80_v42  ;;  %v23_v56 = vsub.f32 %v17_v54, %v22_v52 }
  0x8d   :  { %v99_v44 = vmul.f32 %v98_v39, %v94_v41  ;;  %v77_v45 = vmul.f32 %v76_v38, %v56_v40 }
  0x8e   :  { %v24_v58 = vand.u32 2147483647, %v23_v56 }
  0x8f   :  { %v101_v48 = vmax.f32 %v99_v44, 1e-09  ;;  %v87_v49 = vsub.f32 %v86_v43, %v77_v45 }
  0x90   :  { %v27_v53 = vpop.permute.xlu1 %26 }
  0x91   :  { %151 = vrcp.f32 %v101_v48  ;;  %v88_v50 = vmax.f32 %v87_v49, 1e-09  ;;  %v33_v55 = vsub.f32 %v27_v53, %v32_v51  ;;  %v100_v60 = vsub.f32 %v99_v44, %v87_v49 }
  0x93   :  { %153 = vrcp.f32 %v88_v50  ;;  %v34_v57 = vand.u32 2147483647, %v33_v55 }
  0x95   :  { %v35_v1 = vadd.f32 %v34_v57, %v24_v58  ;;  %v110_v5 = vpop.permute.xlu1 %109 }
  0x96   :  { %vm116_vm0 = vcmp.eq.f32.partialorder %v110_v5, %v115_v3 }
  0x97   :  { %v36_v4 = vmul.f32 5.0, %v35_v1 }
  0x9b   :  { %v152_v59 = vpop.eup %151 }
  0x9c   :  { %v103_v0 = vmul.f32 %v152_v59, %v100_v60 }
  0x9d   :  { %v154_v61 = vpop.eup %153 }
  0x9e   :  { %v90_v63 = vmul.f32 %v154_v61, %v77_v45 }
  0xa0   :  { %v104_v2 = vsub.f32 %v90_v63, %v103_v0 }
  0xa2   :  { %v105_v6 = vmul.f32 2.0, %v104_v2 }
  0xa4   :  { %v106_v7 = vsub.f32 2.0, %v105_v6 }
  0xa6   :  { %v107_v8 = vadd.f32 %v106_v7, %v36_v4 }
  0xa8   :  { %v117_v9 = vsel %vm116_vm0, %v107_v8, 3.4028235e+38 }
  0xa9   :  { %118 = vst [vmem:[#allocation2] sm:$0xff] %v117_v9 }
  0xaa   :  { %166 = shalt.err (!%p163_p4)
}
  0xab   :  { %s167_s16 = scalar_lea.hbm %s223_s2, 128 }
  0xac   :  { %p168_p5 = scmp.ne.s32.totalorder %s223_s2, %s167_s16  ;;  %p171_p6 = scmp.lt.u32.totalorder %s167_s16, %s223_s2 }
  0xae   :  { %p173_p7 = pnand %p171_p6, %p168_p5 }
  0xb0   :  { %176 = shalt.err (!%p173_p7)
}
  0xb1   :  { %128 = dma.vmem_to_hbm [thread:$0]  %s126_s12, 128, %s223_s2, [#allocation3]  }
  0xb2   :  { %177 = dma.done.wait [#allocation3], 128  }
  0xb3   :  { %178 = vsyncadd [#allocation3], 4294967168 }
  0xb4   :  { %132 = vsyncpa [#allocation3], 1 }

</bundles_post_ra>
